<compile_context>
chip_gen: v6e
topology: v6e:2x2x1
jax: 0.10.0
libtpu: 0.0.40
codegen_flags: <defaults>
</compile_context>

<pallas_src>
import functools

import jax
import jax.numpy as jnp
from jax.experimental import pallas as pl
from jax.experimental.pallas import tpu as pltpu


def linear_kernel(x_ref, w_ref, b_ref, o_ref):
    # x_ref: (B_pad, IN), w_ref: (IN, OUT), b_ref: (1, OUT), o_ref: (B_pad, OUT)
    y = jnp.dot(x_ref[...], w_ref[...], preferred_element_type=jnp.float32)
    o_ref[...] = (y + b_ref[...]).astype(o_ref.dtype)


@functools.partial(jax.jit, static_argnames=())
def simple_model_forward(x, weight, bias):
    """Pallas equivalent of SimpleModel.forward: y = x @ W^T + b.

    `weight` is PyTorch layout (out_features, in_features); it is transposed
    here (fused into the surrounding jit, effectively free) so the MXU sees a
    native (M, K) x (K, N) contraction.
    """
    B, IN = x.shape
    OUT = weight.shape[0]

    w_t = weight.T                  # (IN, OUT) — MXU-native RHS layout
    bias2d = bias.reshape(1, OUT)   # 2-D for TPU-friendly broadcast

    # Pad batch up to a multiple of 8 sublanes; slice the result back below.
    B_pad = ((B + 7) // 8) * 8
    if B_pad != B:
        x = jnp.pad(x, ((0, B_pad - B), (0, 0)))

    # Gridless call: whole (tiny) operands sit in VMEM, no pipeline overhead.
    y_pad = pl.pallas_call(
        linear_kernel,
        out_shape=jax.ShapeDtypeStruct((B_pad, OUT), x.dtype),
        in_specs=[
            pl.BlockSpec(memory_space=pltpu.MemorySpace.VMEM),
            pl.BlockSpec(memory_space=pltpu.MemorySpace.VMEM),
            pl.BlockSpec(memory_space=pltpu.MemorySpace.VMEM),
        ],
        out_specs=pl.BlockSpec(memory_space=pltpu.MemorySpace.VMEM),
    )(x, w_t, bias2d)

    # TODO(synk): if batch ever grows large, tile the batch axis with
    # grid=(pl.cdiv(B, TB),) marked "parallel", keeping weight/bias blocks
    # VMEM-resident across iterations.
    return y_pad[:B]


if __name__ == "__main__":
    key = jax.random.PRNGKey(0)
    kx, kw, kb = jax.random.split(key, 3)

    B, IN, OUT = 4, 10, 2

    # Deterministic synthetic parameters (no checkpoint loading).
    x = jax.random.normal(kx, (B, IN), dtype=jnp.float32)
    weight = jax.random.normal(kw, (OUT, IN), dtype=jnp.float32) * 0.1
    bias = jax.random.normal(kb, (OUT,), dtype=jnp.float32) * 0.1

    y = simple_model_forward(x, weight, bias)
    y = jax.block_until_ready(y)

    # Reference check against plain JAX (same math as torch.nn.Linear).
    y_ref = x @ weight.T + bias
    assert y.shape == (B, OUT)
    assert jnp.allclose(y, y_ref, atol=1e-5, rtol=1e-5)

    print("KERNEL_OK")
</pallas_src>

<mosaic_0001>
module attributes {stable_mosaic.version = 11 : i64} {
  func.func @linear_kernel(%arg0: memref<8x10xf32, #tpu.memory_space<vmem>>, %arg1: memref<10x2xf32, #tpu.memory_space<vmem>>, %arg2: memref<1x2xf32, #tpu.memory_space<vmem>>, %arg3: memref<8x2xf32, #tpu.memory_space<vmem>>) attributes {dimension_semantics = [], scalar_prefetch = 0 : i64, scratch_operands = 0 : i64, tpu.core_type = #tpu.core_type<tc>} {
    %c0 = arith.constant 0 : index
    %c0_0 = arith.constant 0 : index
    %0 = vector.load %arg0[%c0, %c0_0] : memref<8x10xf32, #tpu.memory_space<vmem>>, vector<8x10xf32>
    %c0_1 = arith.constant 0 : index
    %c0_2 = arith.constant 0 : index
    %1 = vector.load %arg1[%c0_1, %c0_2] : memref<10x2xf32, #tpu.memory_space<vmem>>, vector<10x2xf32>
    %cst = arith.constant dense<0.000000e+00> : vector<8x2xf32>
    %2 = tpu.matmul %0, %1, %cst {dimension_numbers = #tpu.dot_dimension_numbers<[1], [0], [0], [1], [0, 0, 1, 1], [], []>} : vector<8x10xf32>, vector<10x2xf32>, vector<8x2xf32> -> vector<8x2xf32>
    %c0_3 = arith.constant 0 : index
    %c0_4 = arith.constant 0 : index
    %3 = vector.load %arg2[%c0_3, %c0_4] : memref<1x2xf32, #tpu.memory_space<vmem>>, vector<1x2xf32>
    %4 = vector.broadcast %3 : vector<1x2xf32> to vector<8x2xf32>
    %5 = arith.addf %2, %4 : vector<8x2xf32>
    %c0_5 = arith.constant 0 : index
    %c0_6 = arith.constant 0 : index
    %6 = vector.load %arg3[%c0_5, %c0_6] : memref<8x2xf32, #tpu.memory_space<vmem>>, vector<8x2xf32>
    tpu.vector_store %arg3[%c0_5, %c0_6], %5 {strides = array<i32>} : memref<8x2xf32, #tpu.memory_space<vmem>>, vector<8x2xf32>,
    return
  }
}

</mosaic_0001>

<bundles_post_ra>
// kernel: simple_model_forward.1
= control target key start
LH: loop header
LB: loop body
LE: loop exit
PB: predicated region body
PF: predicated region fallthrough
CT: control target
= control target key end

     0   :  { %vm28_vm0 = vcmask 1041408   ;;  %v123_v0 = vmov 0.0   ;;  %vm124_vm1 = vmmov 0   ;;  %vm24_vm2 = vcmask 80896   ;;  %s160_s1 = inlined_call_operand.vmem [shape: f32[10,2], index: 1, kind: input, shape index: {}]   ;;  %s161_s0 = inlined_call_operand.vmem [shape: f32[8,10], index: 0, kind: input, shape index: {}]   ;;  %s162_s2 = inlined_call_operand.vmem [shape: f32[1,2], index: 2, kind: input, shape index: {}]   ;;  %s163_s3 = inlined_call_operand.vmem [shape: f32[8,2], index: 3, kind: output, shape index: {}]  }
   0x1   :  { %114 = vmatprep.subr.mxu0 %v123_v0  ;;  %v16_v1 = vld [vmem:[%s160_s1 + $0x8] sm:$0x3]  ;;  %v15_v2 = vld [vmem:[%s160_s1] sm:$0xff]  ;;  %118 = vmatprep.mubr.msk.f32.mxu0 %vm124_vm1, %v123_v0  ;;  %vm102_vm3 = vcmask 15360  }
   0x2   :  { %115 = vmatpush3.msk.msra.mxu0 %vm28_vm0, %v16_v1  ;;  %v14_v3 = vld [vmem:[%s161_s0] sm:$0xff] }
   0x3   :  { %116 = vmatprep.subr.mxu0 %v123_v0  ;;  %v108_v4 = vld [vmem:[%s162_s2] ss:$0 sm:$0xff] }
   0x4   :  { %117 = vmatpush3.msra.mxu0 %v15_v2 }
   0x5   :  { %119 = vmatmul.mubr.msk.f32.vlgmr.msra.gmra.mxu0 %vm24_vm2, %v14_v3 }
  0xc5   :  { %v98_v5 = vpop.f32.mrf.mxu0 }
  0xc6   :  { %v99_v6 = vadd.f32 %v108_v4, %v98_v5 }
  0xc7   :  { %v120_v7 = vpop.f32.mrf.mxu0 }
  0xc8   :  { %103 = vst.msk [vmem:[%s163_s3] sm:$0xff] %vm102_vm3, %v99_v6 }

</bundles_post_ra>
